<compile_context>
chip_gen: v7x
topology: tpu7x:2x2x1
jax: 0.10.0
libtpu: 0.0.40
codegen_flags: <defaults>
</compile_context>

<pallas_src>
import functools

import jax
import jax.numpy as jnp
from jax.experimental import pallas as pl
from jax.experimental.pallas import tpu as pltpu


def _round_up(x, m):
    return ((x + m - 1) // m) * m


# ----------------------------- Pallas kernel --------------------------------

def spatial_graph_kernel(x_ref, d_ref, wg_ref, bg_ref, wr_ref, b2_ref, o_ref):
    # x_ref  : (1, C_in, TM)   compute dtype (f32 or bf16)
    # d_ref  : (1, TM)         f32, diag(Adj) per spatial position (lane-dense)
    # wg_ref : (C_out, C_in)   folded gcn weight  (k-sum + main BN scale)
    # bg_ref : (C_out, 1)      folded gcn bias    (k-sum + main BN scale)
    # wr_ref : (C_out, C_in)   folded residual weight (residual BN scale)
    # b2_ref : (C_out, 1)      folded residual bias + residual BN shift + main BN shift
    # o_ref  : (1, C_out, TM)
    x = x_ref[0]                                                        # (C_in, TM)
    d = d_ref[...]                                                      # (1, TM)

    y = jnp.dot(wg_ref[...], x, preferred_element_type=jnp.float32)    # (C_out, TM)
    r = jnp.dot(wr_ref[...], x, preferred_element_type=jnp.float32)    # (C_out, TM)

    acc = (y + bg_ref[...]) * d + r + b2_ref[...]                       # f32 elementwise
    o_ref[0] = jnp.maximum(acc, 0.0).astype(o_ref.dtype)


# --------------------------- parameter folding --------------------------------

def fold_params(params, K, compute_dtype):
    """Fold k-sum and eval-mode BN into the 1x1-conv weights (exact, done in f32)."""
    C_in, KC = params["wg"].shape
    C_out = KC // K

    wg_sum = params["wg"].reshape(C_in, K, C_out).sum(axis=1)          # (C_in, C_out)
    bg_sum = params["bg"].reshape(K, C_out).sum(axis=0)                # (C_out,)

    bnm_scale = params["bnm_scale"].reshape(C_out)
    bnm_shift = params["bnm_shift"].reshape(C_out)
    bnr_scale = params["bnr_scale"].reshape(C_out)
    bnr_shift = params["bnr_shift"].reshape(C_out)
    wr = params["wr"]                                                  # (C_in, C_out)
    br = params["br"].reshape(C_out)

    WgT = (wg_sum * bnm_scale).T                                       # (C_out, C_in)
    bg = (bg_sum * bnm_scale).reshape(C_out, 1)                        # (C_out, 1)
    WrT = (wr * bnr_scale).T                                           # (C_out, C_in)
    b2 = (br * bnr_scale + bnr_shift + bnm_shift).reshape(C_out, 1)    # (C_out, 1)

    return (WgT.astype(compute_dtype), bg.astype(jnp.float32),
            WrT.astype(compute_dtype), b2.astype(jnp.float32))


# ------------------------------- wrapper -------------------------------------

def spatial_graph_layer(x_nchw, adj, params, *, K, tile_m=2048,
                        compute_dtype=jnp.float32):
    N, C_in, T, V = x_nchw.shape
    C_out = params["wr"].shape[1]
    S = T * V

    WgT, bg, WrT, b2 = fold_params(params, K, compute_dtype)

    # lane-dense diag(Adj) stream: d_full[0, t*V + v] = diag(Adj)[v]
    d = jnp.diagonal(adj).astype(jnp.float32)                          # (V,)
    d_full = jnp.tile(d, T).reshape(1, S)                              # (1, T*V)

    # spatial tiling: big lane-dense tiles, pad the tail instead of asserting divisibility
    tile_m = max(128, min(_round_up(tile_m, 128), _round_up(S, 128)))
    S_pad = _round_up(S, tile_m)

    x_flat = x_nchw.reshape(N, C_in, S)                                # pure reshape, no transpose
    if S_pad != S:
        x_flat = jnp.pad(x_flat, ((0, 0), (0, 0), (0, S_pad - S)))
        d_full = jnp.pad(d_full, ((0, 0), (0, S_pad - S)))
    x_flat = x_flat.astype(compute_dtype)

    grid = (N, S_pad // tile_m)

    out_flat = pl.pallas_call(
        spatial_graph_kernel,
        out_shape=jax.ShapeDtypeStruct((N, C_out, S_pad), x_nchw.dtype),
        grid_spec=pltpu.PrefetchScalarGridSpec(
            num_scalar_prefetch=0,
            grid=grid,
            in_specs=[
                pl.BlockSpec((1, C_in, tile_m), lambda n, j: (n, 0, j)),   # x tile
                pl.BlockSpec((1, tile_m), lambda n, j: (0, j)),            # diag(Adj) lane row
                pl.BlockSpec((C_out, C_in), lambda n, j: (0, 0)),          # folded gcn weight
                pl.BlockSpec((C_out, 1), lambda n, j: (0, 0)),             # folded gcn bias
                pl.BlockSpec((C_out, C_in), lambda n, j: (0, 0)),          # folded residual weight
                pl.BlockSpec((C_out, 1), lambda n, j: (0, 0)),             # folded shifts/bias
            ],
            out_specs=pl.BlockSpec((1, C_out, tile_m), lambda n, j: (n, 0, j)),
        ),
        compiler_params=pltpu.CompilerParams(
            dimension_semantics=("parallel", "parallel"),
        ),
    )(x_flat, d_full, WgT, bg, WrT, b2)

    # drop spatial padding; reshape back to NCHW (no transpose needed)
    return out_flat[:, :, :S].reshape(N, C_out, T, V)


# --------------------------- parameter construction --------------------------

def make_params(key, C_in, C_out, K, eps=1e-5):
    ks = jax.random.split(key, 4)
    # conv weights stored transposed (C_in, out_channels) so the math is x @ W
    wg = jax.random.normal(ks[0], (C_in, K * C_out), jnp.float32) * 0.1
    bg = jax.random.normal(ks[1], (1, K * C_out), jnp.float32) * 0.05
    wr = jax.random.normal(ks[2], (C_in, C_out), jnp.float32) * 0.1
    br = jax.random.normal(ks[3], (1, C_out), jnp.float32) * 0.05

    # BatchNorm2d (eval mode), deterministic and non-trivial.
    def bn(offset):
        c = jnp.arange(C_out, dtype=jnp.float32)
        gamma = 1.0 + 0.1 * c + offset
        beta = 0.05 * c - offset
        mean = 0.01 * c
        var = 1.0 + 0.02 * c
        scale = gamma / jnp.sqrt(var + eps)
        shift = beta - mean * scale
        return scale.reshape(1, C_out), shift.reshape(1, C_out)

    bnm_scale, bnm_shift = bn(0.0)
    bnr_scale, bnr_shift = bn(0.1)
    return dict(wg=wg, bg=bg, wr=wr, br=br,
                bnm_scale=bnm_scale, bnm_shift=bnm_shift,
                bnr_scale=bnr_scale, bnr_shift=bnr_shift)


# ------------------------------ pure-JAX reference ---------------------------

def reference(x_nchw, adj, p, *, K):
    C_out = p["wr"].shape[1]
    # gcn 1x1 conv
    y = jnp.einsum("ncTV,co->noTV", x_nchw, p["wg"]) + p["bg"].reshape(1, -1, 1, 1)
    N, KC, T, V = y.shape
    y = y.reshape(N, K, C_out, T, V)
    y = jnp.einsum("nkctv,v->nctv", y, jnp.diagonal(adj))       # torch 'nkctv,vv->nctv'
    y = y * p["bnm_scale"].reshape(1, -1, 1, 1) + p["bnm_shift"].reshape(1, -1, 1, 1)
    # residual branch
    r = jnp.einsum("ncTV,co->noTV", x_nchw, p["wr"]) + p["br"].reshape(1, -1, 1, 1)
    r = r * p["bnr_scale"].reshape(1, -1, 1, 1) + p["bnr_shift"].reshape(1, -1, 1, 1)
    return jnp.maximum(y + r, 0.0)


# ----------------------------------- main ------------------------------------

if __name__ == "__main__":
    N, C_in, C_out, T, V = 2, 4, 8, 16, 16
    max_graph_distance = 2
    K = max_graph_distance + 1            # s_kernel_size

    key = jax.random.PRNGKey(0)
    kx, kadj, kp = jax.random.split(key, 3)
    x = jax.random.normal(kx, (N, C_in, T, V), jnp.float32)
    adj = jax.random.uniform(kadj, (V, V), jnp.float32)
    params = make_params(kp, C_in, C_out, K)

    ref = jax.block_until_ready(reference(x, adj, params, K=K))

    # f32 compute path (strict check against the unfolded reference)
    out = jax.block_until_ready(spatial_graph_layer(x, adj, params, K=K))
    assert out.shape == (N, C_out, T, V)
    err = float(jnp.max(jnp.abs(out - ref)))
    assert jnp.allclose(out, ref, atol=1e-4, rtol=1e-4), err

    # bf16 compute path (recommended on v6e/v7x: halves HBM read traffic for x / weights,
    # matmuls on the bf16 MXU with f32 accumulation, elementwise stays f32)
    out_bf16 = jax.block_until_ready(
        spatial_graph_layer(x, adj, params, K=K, compute_dtype=jnp.bfloat16))
    err_bf16 = float(jnp.max(jnp.abs(out_bf16 - ref)))
    assert jnp.allclose(out_bf16, ref, atol=5e-2, rtol=5e-2), err_bf16

    print("KERNEL_OK")
</pallas_src>

<mosaic_0001>
module attributes {stable_mosaic.version = 11 : i64} {
  func.func @spatial_graph_kernel(%arg0: i32, %arg1: i32, %arg2: memref<1x4x256xf32, #tpu.memory_space<vmem>>, %arg3: memref<1x256xf32, #tpu.memory_space<vmem>>, %arg4: memref<8x4xf32, #tpu.memory_space<vmem>>, %arg5: memref<8x1xf32, #tpu.memory_space<vmem>>, %arg6: memref<8x4xf32, #tpu.memory_space<vmem>>, %arg7: memref<8x1xf32, #tpu.memory_space<vmem>>, %arg8: memref<1x8x256xf32, #tpu.memory_space<vmem>>) attributes {dimension_semantics = [#tpu.dimension_semantics<parallel>, #tpu.dimension_semantics<parallel>], iteration_bounds = array<i64: 2, 1>, scalar_prefetch = 0 : i64, scratch_operands = 0 : i64, tpu.core_type = #tpu.core_type<tc>, window_params = [{transform_indices = @transform_0, window_bounds = array<i64: 1, 4, 256>}, {transform_indices = @transform_1, window_bounds = array<i64: 1, 256>}, {pipeline_mode = #tpu.pipeline_mode<synchronous>, transform_indices = @transform_2, window_bounds = array<i64: 8, 4>}, {pipeline_mode = #tpu.pipeline_mode<synchronous>, transform_indices = @transform_3, window_bounds = array<i64: 8, 1>}, {pipeline_mode = #tpu.pipeline_mode<synchronous>, transform_indices = @transform_4, window_bounds = array<i64: 8, 4>}, {pipeline_mode = #tpu.pipeline_mode<synchronous>, transform_indices = @transform_5, window_bounds = array<i64: 8, 1>}, {transform_indices = @transform_6, window_bounds = array<i64: 1, 8, 256>}]} {
    %c0 = arith.constant 0 : index
    %c0_0 = arith.constant 0 : index
    %c0_1 = arith.constant 0 : index
    %0 = vector.load %arg2[%c0, %c0_0, %c0_1] : memref<1x4x256xf32, #tpu.memory_space<vmem>>, vector<1x4x256xf32>
    %1 = vector.shape_cast %0 : vector<1x4x256xf32> to vector<4x256xf32>
    %c0_2 = arith.constant 0 : index
    %c0_3 = arith.constant 0 : index
    %2 = vector.load %arg3[%c0_2, %c0_3] : memref<1x256xf32, #tpu.memory_space<vmem>>, vector<1x256xf32>
    %c0_4 = arith.constant 0 : index
    %c0_5 = arith.constant 0 : index
    %3 = vector.load %arg4[%c0_4, %c0_5] : memref<8x4xf32, #tpu.memory_space<vmem>>, vector<8x4xf32>
    %cst = arith.constant dense<0.000000e+00> : vector<8x256xf32>
    %4 = tpu.matmul %3, %1, %cst {dimension_numbers = #tpu.dot_dimension_numbers<[1], [0], [0], [1], [0, 0, 1, 1], [], []>} : vector<8x4xf32>, vector<4x256xf32>, vector<8x256xf32> -> vector<8x256xf32>
    %c0_6 = arith.constant 0 : index
    %c0_7 = arith.constant 0 : index
    %5 = vector.load %arg6[%c0_6, %c0_7] : memref<8x4xf32, #tpu.memory_space<vmem>>, vector<8x4xf32>
    %cst_8 = arith.constant dense<0.000000e+00> : vector<8x256xf32>
    %6 = tpu.matmul %5, %1, %cst_8 {dimension_numbers = #tpu.dot_dimension_numbers<[1], [0], [0], [1], [0, 0, 1, 1], [], []>} : vector<8x4xf32>, vector<4x256xf32>, vector<8x256xf32> -> vector<8x256xf32>
    %c0_9 = arith.constant 0 : index
    %c0_10 = arith.constant 0 : index
    %7 = vector.load %arg5[%c0_9, %c0_10] : memref<8x1xf32, #tpu.memory_space<vmem>>, vector<8x1xf32>
    %8 = vector.broadcast %7 : vector<8x1xf32> to vector<8x256xf32>
    %9 = arith.addf %4, %8 : vector<8x256xf32>
    %10 = vector.broadcast %2 : vector<1x256xf32> to vector<8x256xf32>
    %11 = arith.mulf %9, %10 : vector<8x256xf32>
    %12 = arith.addf %11, %6 : vector<8x256xf32>
    %c0_11 = arith.constant 0 : index
    %c0_12 = arith.constant 0 : index
    %13 = vector.load %arg7[%c0_11, %c0_12] : memref<8x1xf32, #tpu.memory_space<vmem>>, vector<8x1xf32>
    %14 = vector.broadcast %13 : vector<8x1xf32> to vector<8x256xf32>
    %15 = arith.addf %12, %14 : vector<8x256xf32>
    %cst_13 = arith.constant 0.000000e+00 : f32
    %16 = vector.broadcast %cst_13 : f32 to vector<8x256xf32>
    %17 = arith.maximumf %15, %16 : vector<8x256xf32>
    %c0_14 = arith.constant 0 : index
    %c0_15 = arith.constant 0 : index
    %c0_16 = arith.constant 0 : index
    %18 = vector.load %arg8[%c0_14, %c0_15, %c0_16] : memref<1x8x256xf32, #tpu.memory_space<vmem>>, vector<1x8x256xf32>
    %19 = vector.shape_cast %18 : vector<1x8x256xf32> to vector<8x256xf32>
    %20 = vector.shape_cast %17 : vector<8x256xf32> to vector<1x8x256xf32>
    tpu.vector_store %arg8[%c0_14, %c0_15, %c0_16], %20 {strides = array<i32>} : memref<1x8x256xf32, #tpu.memory_space<vmem>>, vector<1x8x256xf32>,
    return
  }
  func.func @transform_0(%arg0: i32, %arg1: i32) -> (i32, i32, i32) {
    %c0_i32 = arith.constant 0 : i32
    %c0_i32_0 = arith.constant 0 : i32
    return %arg0, %c0_i32, %arg1 : i32, i32, i32
  }
  func.func @transform_1(%arg0: i32, %arg1: i32) -> (i32, i32) {
    %c0_i32 = arith.constant 0 : i32
    %c0_i32_0 = arith.constant 0 : i32
    return %c0_i32, %arg1 : i32, i32
  }
  func.func @transform_2(%arg0: i32, %arg1: i32) -> (i32, i32) {
    %c0_i32 = arith.constant 0 : i32
    %c0_i32_0 = arith.constant 0 : i32
    %c0_i32_1 = arith.constant 0 : i32
    return %c0_i32, %c0_i32_0 : i32, i32
  }
  func.func @transform_3(%arg0: i32, %arg1: i32) -> (i32, i32) {
    %c0_i32 = arith.constant 0 : i32
    %c0_i32_0 = arith.constant 0 : i32
    %c0_i32_1 = arith.constant 0 : i32
    return %c0_i32, %c0_i32_0 : i32, i32
  }
  func.func @transform_4(%arg0: i32, %arg1: i32) -> (i32, i32) {
    %c0_i32 = arith.constant 0 : i32
    %c0_i32_0 = arith.constant 0 : i32
    %c0_i32_1 = arith.constant 0 : i32
    return %c0_i32, %c0_i32_0 : i32, i32
  }
  func.func @transform_5(%arg0: i32, %arg1: i32) -> (i32, i32) {
    %c0_i32 = arith.constant 0 : i32
    %c0_i32_0 = arith.constant 0 : i32
    %c0_i32_1 = arith.constant 0 : i32
    return %c0_i32, %c0_i32_0 : i32, i32
  }
  func.func @transform_6(%arg0: i32, %arg1: i32) -> (i32, i32, i32) {
    %c0_i32 = arith.constant 0 : i32
    %c0_i32_0 = arith.constant 0 : i32
    return %arg0, %c0_i32, %arg1 : i32, i32, i32
  }
}

</mosaic_0001>

<bundles_post_ra>
// kernel: tpu_custom_call.1
= control target key start
LH: loop header
LB: loop body
LE: loop exit
PB: predicated region body
PF: predicated region fallthrough
CT: control target
= control target key end

     0   :  { %11 = vsyncpa [#allocation3], 0  ;;  %s924_s0 = inlined_call_operand.vmem [shape: f32[2,4,256], index: 0, kind: input, shape index: {}]   ;;  %s925_s1 = inlined_call_operand.vmem [shape: f32[1,256], index: 1, kind: input, shape index: {}]   ;;  %s926_s2 = inlined_call_operand.vmem [shape: f32[8,4], index: 2, kind: input, shape index: {}]   ;;  %s927_s3 = inlined_call_operand.vmem [shape: f32[8,1], index: 3, kind: input, shape index: {}]   ;;  %s928_s4 = inlined_call_operand.vmem [shape: f32[8,4], index: 4, kind: input, shape index: {}]   ;;  %s929_s5 = inlined_call_operand.vmem [shape: f32[8,1], index: 5, kind: input, shape index: {}]   ;;  %s930_s6 = inlined_call_operand.hbm [shape: f32[2,8,256], index: 6, kind: output, shape index: {}]  }
   0x1   :  { %13 = vsyncpa [#allocation3 + $0x1], 0  ;;  %s797_s21 = smov 0   ;;  %s799_s22 = smov 0  }
   0x2   :  { %s801_s23 = smov 0   ;;  %s803_s24 = smov 0  }
   0x3   :  { %s805_s25 = smov 0   ;;  %s807_s26 = smov 0  }
   0x4 LB: > { %s598_s27 = sadd.s32 4294967295, %s757_s26   ;;  %s599_s28 = sadd.s32 4294967294, %s757_s26   ;;  %s757_s26 = sphi %s807_s26, %s19_s26   ;;  %s753_s25 = sphi %s805_s25, %s937_s25   ;;  %s749_s24 = sphi %s803_s24, %s936_s24   ;;  %s745_s23 = sphi %s801_s23, %s935_s23   ;;  %s741_s22 = sphi %s799_s22, %s934_s22   ;;  %s737_s21 = sphi %s797_s21, %s933_s21  }
   0x5   : > { %s31_s29 = sadd.s32 1, %s753_s25  ;;  %s178_s30 = sadd.s32 1, %s745_s23 }
   0x6   : > { %p33_p0 = scmp.ge.s32.totalorder %s31_s29, 2  ;;  %p188_p1 = scmp.ne.s32.totalorder %s745_s23, %s741_s22 }
   0x7   : > { %p189_p2 = scmp.eq.s32.totalorder %s598_s27, 1  ;;  %p194_p3 = scmp.ne.s32.totalorder %s741_s22, %s737_s21 }
   0x8   : > { %s939_s29 = smov (%p33_p0, %s31_s29), 0  ;;  %p195_p5 = scmp.eq.s32.totalorder %s599_s28, 1 }
   0x9   : > { %p837_p4 = por %p189_p2, %p188_p1  ;;  %s173_s8 = ssub.s32 %s753_s25, %s939_s29 }
   0xa   : > { %p603_p6 = scmp.ge.s32.totalorder %s757_s26, 1  ;;  %p176_p7 = scmp.eq.s32.totalorder %s173_s8, 0 }
   0xb   : > { %p844_p8 = por %p195_p5, %p194_p3  ;;  %p246_p9 = scmp.lt.s32.totalorder %s757_s26, 3 }
   0xc   : > { %s850_s10 = scalar_select %p176_p7, %s745_s23, %s178_s30  }
   0xd   : > { %p247_p10 = pnand %p603_p6, %p246_p9 }
   0xe   : > { %p285_p11 = scmp.lt.s32.totalorder (!%p247_p10), %s749_s24, 1  ;;  %v759_v0 = vmov (!%p247_p10), 0.0   ;;  %v386_v1 = vld [vmem:[%s927_s3] sm:$0xff] (!%p247_p10)  ;;  %v760_v2 = vmov (!%p247_p10), 0   ;;  %vm310_vm0 = vcmask (!%p247_p10), 1043456   ;;  %vm306_vm1 = vcmask (!%p247_p10), 31744  }
   0xf   : > { %250 = sbr.rel (%p247_p10) target bundleno = 268 (0x10c), region = 44  ;;  %459 = vmatprep.mubr.f32.mxu1 (!%p247_p10), %v759_v0  ;;  %379 = vmatprep.mubr.f32.mxu0 (!%p247_p10), %v759_v0  ;;  %v481_v3 = vld [vmem:[%s929_s5] sm:$0xff] (!%p247_p10)  ;;  %v467_v8 = vlaneseq (!%p247_p10)  ;;  %s281_s12 = sand.u32 (!%p247_p10), 1, %s741_s22  }
  0x10   : > { %677 = vset.pattern.permute.xlu0 (!%p247_p10), %v760_v2  ;;  %v302_v6 = vld [vmem:[%s926_s2] sm:$0xff] (!%p247_p10)  ;;  %s494_s20 = scalar_lea.sflag (!%p247_p10), [#allocation3], %s281_s12 }
  0x11   : > { %389 = vperm.xlu0 (!%p247_p10), %677, %v386_v1   ;;  %v303_v7 = vld [vmem:[%s928_s4] sm:$0xff] (!%p247_p10)  ;;  %v468_v9 = vshrl.u32 (!%p247_p10), %v467_v8, 7 }
  0x12   : > { %v301_v11 = vld [vmem:[%s925_s1] sm:$0x3] (!%p247_p10) }
  0x13   : > { %v469_v10 = vsub.s32 (!%p247_p10), 0, %v468_v9  ;;  %v473_v12 = vsub.s32 (!%p247_p10), 1, %v468_v9 }
  0x15   : > { %484 = vperm.xlu0 (!%p247_p10), %677, %v481_v3   ;;  %v470_v14 = vrot.slane (!%p247_p10), %v301_v11, %v469_v10  ;;  %v474_v17 = vrot.slane (!%p247_p10), %v301_v11, %v473_v12 }
  0x16   : > { %s286_s13 = scalar_select %p285_p11, %s749_s24, 1 }
  0x18   : > { %s618_s14 = sshll.u32 %s286_s13, 3  ;;  %s604_s13 = sshll.u32 %s281_s12, 4 }
  0x19   : > { %s292_s19 = scalar_lea.vmem %s924_s0, %s618_s14  ;;  %s619_s14 = sshll.u32 %s749_s24, 8 }
  0x1a   : > { %v300_v4 = vld [vmem:[%s292_s19] sm:$0xff]  ;;  %s283_s15 = scalar_lea.vmem [#allocation2], %s604_s13  ;;  %s877_s19 = scalar_lea.hbm %s930_s6, %s619_s14 }
  0x1b   : > { %v305_v5 = vcombine.high %v300_v4, %v300_v4  ;;  %s510_s16 = sshll.u32 %s283_s15, 4  ;;  %s761_s24 = smov [#allocation2]   ;;  %s879_s16 = int_to_ptr.vmem [resolvable:$true] %s510_s16 }
  0x1c   : > { %s679_s27 = scalar_lea.vmem %s879_s16, 256  ;;  %s683_s28 = sshll.u32 %s761_s24, 4  ;;  %s684_s28 = int_to_ptr.vmem [resolvable:$false] %s683_s28 }
  0x1d   : > { %610 = vmatprep.subr.msk.mxu1 %vm310_vm0, %v305_v5  ;;  %607 = vmatprep.subr.msk.mxu0 %vm310_vm0, %v305_v5  ;;  %p680_p12 = scmp.ne.s32.totalorder %s879_s16, %s679_s27  ;;  %s685_s30 = scalar_lea.vmem %s684_s28, 512 }
  0x1e   : > { %611 = vmatpush1.msk.msra.mxu1 %vm310_vm0, %v300_v4  ;;  %608 = vmatpush1.msk.msra.mxu0 %vm310_vm0, %v300_v4  ;;  %p686_p1 = scmp.lt.s32.totalorder %s879_s16, %s684_s28  ;;  %p687_p2 = scmp.lt.s32.totalorder %s685_s30, %s679_s27 }
  0x1f   : > { %612 = vmatmul.mubr.msk.f32.vlgmr.msra.gmra.mrb[0].mxu1 %vm306_vm1, %v302_v6  ;;  %609 = vmatmul.mubr.msk.f32.vlgmr.msra.gmra.mrb[0].mxu0 %vm306_vm1, %v303_v7  ;;  %p681_p13 = pnand %p680_p12, %p837_p4 }
  0x20   : > { %p688_p3 = por %p687_p2, %p686_p1 }
  0x21   : > { %p682_p0 = pneg %p681_p13 }
  0x23   : > { %p689_p5 = pnand %p688_p3, %p682_p0 }
  0x90   : > { %v390_v13 = vpop.permute.xlu0 %389 }
  0x94   : > { %v485_v25 = vpop.permute.xlu0 %484 }
  0xf2   : > { %v461_v15 = vpop.f32.mrb[0].mxu1  ;;  %v381_v16 = vpop.f32.mrb[0].mxu0 }
  0xf3   : > { %v462_v18 = vadd.f32 %v461_v15, %v390_v13  ;;  %v463_v19 = vpop.f32.mrb[1].mxu1  ;;  %v383_v20 = vpop.f32.mrb[1].mxu0 }
  0xf4   : > { %v464_v21 = vadd.f32 %v463_v19, %v390_v13 }
  0xf5   : > { %v477_v22 = vmul.f32 %v470_v14, %v462_v18 }
  0xf6   : > { %v478_v23 = vmul.f32 %v474_v17, %v464_v21 }
  0xf7   : > { %v479_v24 = vadd.f32 %v477_v22, %v381_v16 }
  0xf8   : > { %v480_v26 = vadd.f32 %v478_v23, %v383_v20 }
  0xf9   : > { %v487_v27 = vadd.f32 %v485_v25, %v479_v24 }
  0xfa   : > { %v488_v28 = vadd.f32 %v485_v25, %v480_v26 }
  0xfb   : > { %v489_v29 = vmax.f32 %v487_v27, 0.0 }
  0xfc   : > { %v490_v30 = vmax.f32 %v488_v28, 0.0 }
  0xfd   : > { %491 = vst [vmem:[%s283_s15] sm:$0xff] %v489_v29 }
  0xfe   : > { %492 = vst [vmem:[%s283_s15 + $0x8] sm:$0xff] %v490_v30 }
  0xff   : > { %692 = shalt.err (!%p689_p5)
}
 0x100   : > { %s693_s8 = scalar_lea.hbm %s877_s19, 256  ;;  %s697_s13 = scalar_lea.hbm %s930_s6, 512 }
 0x101   : > { %p694_p6 = scmp.ne.s32.totalorder %s877_s19, %s693_s8  ;;  %p698_p10 = scmp.lt.u32.totalorder %s877_s19, %s930_s6 }
 0x102   : > { %p699_p11 = scmp.lt.u32.totalorder %s697_s13, %s693_s8  ;;  %p701_p13 = scmp.lt.u32.totalorder %s693_s8, %s877_s19 }
 0x103   : > { %p695_p7 = pnand %p694_p6, %p837_p4 }
 0x104   : > { %p700_p12 = por %p699_p11, %p698_p10 }
 0x105   : > { %p696_p9 = pneg %p695_p7 }
 0x106   : > { %p702_p0 = por %p701_p13, %p700_p12 }
 0x108   : > { %p703_p1 = pnand %p702_p0, %p696_p9 }
 0x10a   : > { %706 = shalt.err (!%p703_p1)
}
 0x10b   : > { %620 = dma.vmem_to_hbm [thread:$0]  (%p837_p4), %s879_s16, 256, %s877_s19, %s494_s20  }
 0x10c PF: > { %p626_p2 = scmp.ge.s32.totalorder %s757_s26, 2  ;;  %s522_s17 = sand.u32 1, %s737_s21  }
 0x10d   : > { %s523_s18 = scalar_lea.sflag [#allocation3], %s522_s17 }
 0x10e   : > { %p623_p3 = pnand %p626_p2, %p844_p8 }
 0x110   : > { %732 = dma.done.wait (!%p623_p3), %s523_s18, 256  }
 0x111   : > { %734 = vsyncadd (!%p623_p3), %s523_s18, 4294967040  ;;  %s19_s26 = sadd.s32 1, %s757_s26   ;;  %s933_s21 = smov %s741_s22 }
 0x112   : > { %p16_p5 = scmp.ge.s32.totalorder %s19_s26, 4   ;;  %s934_s22 = smov %s745_s23 }
 0x113   : > { %s935_s23 = smov %s850_s10  ;;  %s936_s24 = smov %s753_s25 }
 0x114   : > { %s937_s25 = smov %s939_s29  ;;  %18 = sbr.rel (!%p16_p5) target bundleno = 4 (0x4), region = 82 }
 0x11b   :  { %528 = vsyncpa [#allocation3], 1 }
 0x11c   :  { %530 = vsyncpa [#allocation3 + $0x1], 1 }

</bundles_post_ra>
